<compile_context>
chip_gen: v7x
topology: tpu7x:2x2x1
jax: 0.10.0
libtpu: 0.0.40
codegen_flags: <defaults>
</compile_context>

<pallas_src>
import jax
import jax.numpy as jnp
from jax.experimental import pallas as pl
from jax.experimental.pallas import tpu as pltpu

# ---- small synthetic config (EMBEDDING_SIZE=500 scaled down to 128) ----
VOCAB = 50
NUM_CLASSES = 3
EMB = 128
NUM_FILTERS = 10
WINDOW_SIZES = (1, 2, 3, 5)
BATCH = 2
SEQ = 12

N_WS = len(WINDOW_SIZES)
MAX_WS = max(WINDOW_SIZES)
P = MAX_WS - 1                 # common zero-pad applied once on the host
SPOS = SEQ + P                 # candidate conv start positions per batch row (16)
SFULL = SEQ + 2 * P            # padded rows per batch row (20)
N_PAD = 128                    # lane-dense padded filter / class dimension
K_IM2COL = MAX_WS * EMB        # im2col contraction size (640)
MASK_NEG = -4.0                # additive mask value for invalid (tanh in (-1,1))

MATMUL_DTYPE = jnp.float32     # set to jnp.bfloat16 on v6e/v7x for the MXU win


def cnn_text_kernel(x_ref, w_ref, b_ref, mask_ref, fcw_ref, fcb_ref, out_ref):
    # Fused conv for all window sizes and both batch rows: one MXU matmul.
    conv = jnp.dot(x_ref[...], w_ref[...],
                   preferred_element_type=jnp.float32)          # (B*SPOS, N_PAD)
    vals = jnp.tanh(conv + b_ref[...]) + mask_ref[...]          # f32 VPU/EUP math

    # Global max-pool over positions, per batch row (static, sublane-aligned).
    feats = [jnp.max(vals[b * SPOS:(b + 1) * SPOS], axis=0, keepdims=True)
             for b in range(BATCH)]
    feat = jnp.concatenate(feats, axis=0)                        # (B, N_PAD)

    # Single fc matmul; logits written lane-dense (padded classes are zero).
    logits = jnp.dot(feat.astype(fcw_ref.dtype), fcw_ref[...],
                     preferred_element_type=jnp.float32) + fcb_ref[...]
    out_ref[...] = logits


def build_im2col(x_idx, emb_table):
    # host-side layout plumbing: embedding gather + common zero pad + im2col
    emb = jnp.take(emb_table, x_idx, axis=0)                     # (B, SEQ, EMB)
    x_pad = jnp.pad(emb, ((0, 0), (P, P), (0, 0)))               # (B, SFULL, EMB)
    cols = jnp.stack([x_pad[:, k:k + SPOS, :] for k in range(MAX_WS)], axis=2)
    return cols.reshape(BATCH * SPOS, K_IM2COL)                  # (B*SPOS, MAX_WS*EMB)


@jax.jit
def cnn_text_forward(x_idx, packed):
    x = build_im2col(x_idx, packed['emb']).astype(MATMUL_DTYPE)

    vmem = pl.BlockSpec(memory_space=pltpu.MemorySpace.VMEM)
    logits = pl.pallas_call(
        cnn_text_kernel,
        out_shape=jax.ShapeDtypeStruct((BATCH, N_PAD), jnp.float32),
        in_specs=[vmem] * 6,
        out_specs=vmem,
    )(x,
      packed['w_all'].astype(MATMUL_DTYPE),
      packed['b_all'],
      packed['mask'],
      packed['fc_w'].astype(MATMUL_DTYPE),
      packed['fc_b'])

    # tiny 3-class softmax epilogue on the host (keeps kernel store lane-dense)
    return jax.nn.softmax(logits[:, :NUM_CLASSES], axis=1)


def init_params(key):
    keys = jax.random.split(key, 2 + 2 * N_WS + 2)
    params = {}
    params['emb'] = jax.random.normal(keys[0], (VOCAB, EMB), jnp.float32) * 0.1
    conv_w, conv_b = {}, {}
    for i, ws in enumerate(WINDOW_SIZES):
        # kernel layout: W[k, e, f] == torch conv.weight[f, 0, k, e]
        conv_w[ws] = jax.random.normal(keys[1 + 2 * i],
                                       (ws, EMB, NUM_FILTERS), jnp.float32) * 0.05
        conv_b[ws] = jax.random.normal(keys[2 + 2 * i],
                                       (1, NUM_FILTERS), jnp.float32) * 0.05
    params['conv_w'] = conv_w
    params['conv_b'] = conv_b

    fc_in = NUM_FILTERS * N_WS
    # fc_wT[f * N_WS + w, c] == torch fc.weight[c, f * N_WS + w]
    params['fc_wT'] = jax.random.normal(keys[-2], (fc_in, NUM_CLASSES),
                                        jnp.float32) * 0.1
    params['fc_b'] = jax.random.normal(keys[-1], (NUM_CLASSES,), jnp.float32) * 0.1
    return params


def pack_params(params):
    """One-time host-side packing into lane-dense kernel operands."""
    # Fused conv weight / bias: column block wi*NUM_FILTERS..+NUM_FILTERS-1
    # holds window WINDOW_SIZES[wi]; shift-k rows k*EMB..(k+1)*EMB-1.
    w_all = jnp.zeros((K_IM2COL, N_PAD), jnp.float32)
    b_all = jnp.zeros((1, N_PAD), jnp.float32)
    for wi, ws in enumerate(WINDOW_SIZES):
        c0 = wi * NUM_FILTERS
        W = params['conv_w'][ws]                                 # (ws, EMB, NF)
        for k in range(ws):
            w_all = w_all.at[k * EMB:(k + 1) * EMB, c0:c0 + NUM_FILTERS].set(W[k])
        b_all = b_all.at[0, c0:c0 + NUM_FILTERS].set(params['conv_b'][ws][0])

    # Additive position-validity mask (matches torch padding=(ws-1, 0) output
    # range: start positions s in [P-ws+1, P+SEQ-1]). Padded filter columns
    # stay invalid; their fc weight rows are zero so they never contribute.
    mask = jnp.full((SPOS, N_PAD), MASK_NEG, jnp.float32)
    for wi, ws in enumerate(WINDOW_SIZES):
        c0 = wi * NUM_FILTERS
        mask = mask.at[P - ws + 1:SPOS, c0:c0 + NUM_FILTERS].set(0.0)
    mask = jnp.tile(mask, (BATCH, 1))                            # (B*SPOS, N_PAD)

    # fc weight: kernel feature index wi*NF + f  <-  torch index f*N_WS + wi
    fc_perm = (params['fc_wT']
               .reshape(NUM_FILTERS, N_WS, NUM_CLASSES)
               .transpose(1, 0, 2)
               .reshape(N_WS * NUM_FILTERS, NUM_CLASSES))
    fc_w = jnp.zeros((N_PAD, N_PAD), jnp.float32)
    fc_w = fc_w.at[:N_WS * NUM_FILTERS, :NUM_CLASSES].set(fc_perm)
    fc_b = jnp.zeros((1, N_PAD), jnp.float32).at[0, :NUM_CLASSES].set(params['fc_b'])

    return {'emb': params['emb'], 'w_all': w_all, 'b_all': b_all,
            'mask': mask, 'fc_w': fc_w, 'fc_b': fc_b}


def reference_forward(x_idx, params):
    # pure-JAX replica of the PyTorch forward for verification
    B = x_idx.shape[0]
    emb = jnp.take(params['emb'], x_idx, axis=0)
    feats = []
    for ws in WINDOW_SIZES:
        W = params['conv_w'][ws]
        b = params['conv_b'][ws]
        p = ws - 1
        xp = jnp.pad(emb, ((0, 0), (p, p), (0, 0)))
        sout = SEQ + ws - 1
        out = jnp.zeros((B, sout, NUM_FILTERS), jnp.float32) + b
        for k in range(ws):
            out = out + jnp.einsum('bse,ef->bsf', xp[:, k:k + sout, :], W[k])
        feats.append(jnp.max(jnp.tanh(out), axis=1))             # (B, NF)
    pooled = jnp.stack(feats, axis=2).reshape(B, -1)             # index = f*N_WS + w
    logits = pooled @ params['fc_wT'] + params['fc_b']
    return jax.nn.softmax(logits, axis=1)


if __name__ == "__main__":
    key = jax.random.PRNGKey(0)
    kp, kx = jax.random.split(key)
    params = init_params(kp)
    packed = pack_params(params)
    x_idx = jax.random.randint(kx, (BATCH, SEQ), 0, VOCAB, dtype=jnp.int32)

    probs = jax.block_until_ready(cnn_text_forward(x_idx, packed))

    ref = reference_forward(x_idx, params)
    assert probs.shape == (BATCH, NUM_CLASSES)
    atol = 1e-4 if MATMUL_DTYPE == jnp.float32 else 3e-2
    assert jnp.allclose(probs, ref, atol=atol, rtol=1e-3)
    print("KERNEL_OK")
</pallas_src>

<mosaic_0001>
module attributes {stable_mosaic.version = 11 : i64} {
  func.func @cnn_text_kernel(%arg0: memref<32x640xf32, #tpu.memory_space<vmem>>, %arg1: memref<640x128xf32, #tpu.memory_space<vmem>>, %arg2: memref<1x128xf32, #tpu.memory_space<vmem>>, %arg3: memref<32x128xf32, #tpu.memory_space<vmem>>, %arg4: memref<128x128xf32, #tpu.memory_space<vmem>>, %arg5: memref<1x128xf32, #tpu.memory_space<vmem>>, %arg6: memref<2x128xf32, #tpu.memory_space<vmem>>) attributes {dimension_semantics = [], scalar_prefetch = 0 : i64, scratch_operands = 0 : i64, tpu.core_type = #tpu.core_type<tc>} {
    %c0 = arith.constant 0 : index
    %c0_0 = arith.constant 0 : index
    %0 = vector.load %arg0[%c0, %c0_0] : memref<32x640xf32, #tpu.memory_space<vmem>>, vector<32x640xf32>
    %c0_1 = arith.constant 0 : index
    %c0_2 = arith.constant 0 : index
    %1 = vector.load %arg1[%c0_1, %c0_2] : memref<640x128xf32, #tpu.memory_space<vmem>>, vector<640x128xf32>
    %cst = arith.constant dense<0.000000e+00> : vector<32x128xf32>
    %2 = tpu.matmul %0, %1, %cst {dimension_numbers = #tpu.dot_dimension_numbers<[1], [0], [0], [1], [0, 0, 1, 1], [], []>} : vector<32x640xf32>, vector<640x128xf32>, vector<32x128xf32> -> vector<32x128xf32>
    %c0_3 = arith.constant 0 : index
    %c0_4 = arith.constant 0 : index
    %3 = vector.load %arg2[%c0_3, %c0_4] : memref<1x128xf32, #tpu.memory_space<vmem>>, vector<1x128xf32>
    %4 = vector.broadcast %3 : vector<1x128xf32> to vector<32x128xf32>
    %5 = arith.addf %2, %4 : vector<32x128xf32>
    %6 = math.tanh %5 : vector<32x128xf32>
    %c0_5 = arith.constant 0 : index
    %c0_6 = arith.constant 0 : index
    %7 = vector.load %arg3[%c0_5, %c0_6] : memref<32x128xf32, #tpu.memory_space<vmem>>, vector<32x128xf32>
    %8 = arith.addf %6, %7 : vector<32x128xf32>
    %9 = vector.extract_strided_slice %8 {offsets = [0, 0], sizes = [16, 128], strides = [1, 1]} : vector<32x128xf32> to vector<16x128xf32>
    %cst_7 = arith.constant dense<0xFF800000> : vector<128xf32>
    %10 = vector.multi_reduction <maximumf>, %9, %cst_7 [0] : vector<16x128xf32> to vector<128xf32>
    %11 = vector.shape_cast %10 : vector<128xf32> to vector<1x128xf32>
    %12 = vector.extract_strided_slice %8 {offsets = [16, 0], sizes = [16, 128], strides = [1, 1]} : vector<32x128xf32> to vector<16x128xf32>
    %cst_8 = arith.constant dense<0xFF800000> : vector<128xf32>
    %13 = vector.multi_reduction <maximumf>, %12, %cst_8 [0] : vector<16x128xf32> to vector<128xf32>
    %14 = vector.shape_cast %13 : vector<128xf32> to vector<1x128xf32>
    %15 = tpu.concatenate %11, %14 in 0 : vector<1x128xf32>, vector<1x128xf32> -> vector<2x128xf32>
    %c0_9 = arith.constant 0 : index
    %c0_10 = arith.constant 0 : index
    %16 = vector.load %arg4[%c0_9, %c0_10] : memref<128x128xf32, #tpu.memory_space<vmem>>, vector<128x128xf32>
    %cst_11 = arith.constant dense<0.000000e+00> : vector<2x128xf32>
    %17 = tpu.matmul %15, %16, %cst_11 {dimension_numbers = #tpu.dot_dimension_numbers<[1], [0], [0], [1], [0, 0, 1, 1], [], []>} : vector<2x128xf32>, vector<128x128xf32>, vector<2x128xf32> -> vector<2x128xf32>
    %c0_12 = arith.constant 0 : index
    %c0_13 = arith.constant 0 : index
    %18 = vector.load %arg5[%c0_12, %c0_13] : memref<1x128xf32, #tpu.memory_space<vmem>>, vector<1x128xf32>
    %19 = vector.broadcast %18 : vector<1x128xf32> to vector<2x128xf32>
    %20 = arith.addf %17, %19 : vector<2x128xf32>
    %c0_14 = arith.constant 0 : index
    %c0_15 = arith.constant 0 : index
    %21 = vector.load %arg6[%c0_14, %c0_15] : memref<2x128xf32, #tpu.memory_space<vmem>>, vector<2x128xf32>
    tpu.vector_store %arg6[%c0_14, %c0_15], %20 {strides = array<i32>} : memref<2x128xf32, #tpu.memory_space<vmem>>, vector<2x128xf32>,
    return
  }
}

</mosaic_0001>

<bundles_post_ra>
// kernel: cnn_text_forward.1
= control target key start
LH: loop header
LB: loop body
LE: loop exit
PB: predicated region body
PF: predicated region fallthrough
CT: control target
= control target key end

     0   :  { %vm843_vm0 = vmmov 0   ;;  %vm411_vm1 = vcmask 1040384   ;;  %s1249_s1 = inlined_call_operand.vmem [shape: f32[640,128], index: 1, kind: input, shape index: {}]   ;;  %s1250_s0 = inlined_call_operand.vmem [shape: f32[32,640], index: 0, kind: input, shape index: {}]   ;;  %s1251_s4 = inlined_call_operand.vmem [shape: f32[128,128], index: 4, kind: input, shape index: {}]   ;;  %s1252_s2 = inlined_call_operand.vmem [shape: f32[1,128], index: 2, kind: input, shape index: {}]   ;;  %s1253_s3 = inlined_call_operand.vmem [shape: f32[32,128], index: 3, kind: input, shape index: {}]   ;;  %s1254_s5 = inlined_call_operand.vmem [shape: f32[1,128], index: 5, kind: input, shape index: {}]   ;;  %s1255_s6 = inlined_call_operand.vmem [shape: f32[2,128], index: 6, kind: output, shape index: {}]  }
   0x1   :  { %v59_v0 = vld [vmem:[%s1249_s1 + $0x80] sm:$0xff]  ;;  %v60_v1 = vld [vmem:[%s1249_s1 + $0x88] sm:$0xff]  ;;  %v61_v11 = vld [vmem:[%s1249_s1 + $0x90] sm:$0xff] }
   0x2   :  { %v43_v2 = vld [vmem:[%s1249_s1] sm:$0xff]  ;;  %v711_v3 = vpack.c.bf16 %v60_v1, %v59_v0  ;;  %v44_v4 = vld [vmem:[%s1249_s1 + $0x8] sm:$0xff]  ;;  %v62_v13 = vld [vmem:[%s1249_s1 + $0x98] sm:$0xff] }
   0x3   :  { %v91_v5 = vld [vmem:[%s1249_s1 + $0x180] sm:$0xff]  ;;  %v92_v6 = vld [vmem:[%s1249_s1 + $0x188] sm:$0xff]  ;;  %v713_v7 = vpack.c.bf16 %v44_v4, %v43_v2  ;;  %v45_v14 = vld [vmem:[%s1249_s1 + $0x10] sm:$0xff]  ;;  %v715_v16 = vpack.c.bf16 %v62_v13, %v61_v11 }
   0x4   :  { %v743_v8 = vpack.c.bf16 %v92_v6, %v91_v5  ;;  %v75_v9 = vld [vmem:[%s1249_s1 + $0x100] sm:$0xff]  ;;  %v76_v10 = vld [vmem:[%s1249_s1 + $0x108] sm:$0xff]  ;;  %712 = vmatprep.subr.bf16.mxu0 %v711_v3  ;;  %v46_v15 = vld [vmem:[%s1249_s1 + $0x18] sm:$0xff] }
   0x5   :  { %v745_v12 = vpack.c.bf16 %v76_v10, %v75_v9  ;;  %714 = vmatpush3.bf16.msra.mxu0 %v713_v7  ;;  %v717_v17 = vpack.c.bf16 %v46_v15, %v45_v14  ;;  %v93_v18 = vld [vmem:[%s1249_s1 + $0x190] sm:$0xff]  ;;  %v94_v19 = vld [vmem:[%s1249_s1 + $0x198] sm:$0xff]  ;;  %v63_v23 = vld [vmem:[%s1249_s1 + $0xa0] sm:$0xff] }
   0x6   :  { %744 = vmatprep.subr.bf16.mxu1 %v743_v8  ;;  %v77_v20 = vld [vmem:[%s1249_s1 + $0x110] sm:$0xff]  ;;  %v747_v21 = vpack.c.bf16 %v94_v19, %v93_v18  ;;  %v78_v22 = vld [vmem:[%s1249_s1 + $0x118] sm:$0xff]  ;;  %v64_v24 = vld [vmem:[%s1249_s1 + $0xa8] sm:$0xff]  ;;  %716 = vmatprep.subr.bf16.mxu0 %v715_v16 }
   0x7   :  { %746 = vmatpush3.bf16.msra.mxu1 %v745_v12  ;;  %v749_v25 = vpack.c.bf16 %v78_v22, %v77_v20  ;;  %v719_v26 = vpack.c.bf16 %v64_v24, %v63_v23  ;;  %v47_v27 = vld [vmem:[%s1249_s1 + $0x20] sm:$0xff]  ;;  %v48_v28 = vld [vmem:[%s1249_s1 + $0x28] sm:$0xff]  ;;  %v65_v35 = vld [vmem:[%s1249_s1 + $0xb0] sm:$0xff] }
   0x8   :  { %v95_v29 = vld [vmem:[%s1249_s1 + $0x1a0] sm:$0xff]  ;;  %748 = vmatprep.subr.bf16.mxu1 %v747_v21  ;;  %v96_v30 = vld [vmem:[%s1249_s1 + $0x1a8] sm:$0xff]  ;;  %v721_v33 = vpack.c.bf16 %v48_v28, %v47_v27  ;;  %v66_v36 = vld [vmem:[%s1249_s1 + $0xb8] sm:$0xff] }
   0x9   :  { %v79_v31 = vld [vmem:[%s1249_s1 + $0x120] sm:$0xff]  ;;  %v80_v32 = vld [vmem:[%s1249_s1 + $0x128] sm:$0xff]  ;;  %718 = vmatpush3.bf16.msra.mxu0 %v717_v17  ;;  %v751_v34 = vpack.c.bf16 %v96_v30, %v95_v29  ;;  %v49_v37 = vld [vmem:[%s1249_s1 + $0x30] sm:$0xff]  ;;  %v723_v39 = vpack.c.bf16 %v66_v36, %v65_v35 }
   0xa   :  { %720 = vmatprep.subr.bf16.mxu0 %v719_v26  ;;  %v753_v38 = vpack.c.bf16 %v80_v32, %v79_v31  ;;  %v50_v40 = vld [vmem:[%s1249_s1 + $0x38] sm:$0xff]  ;;  %v97_v41 = vld [vmem:[%s1249_s1 + $0x1b0] sm:$0xff]  ;;  %v67_v46 = vld [vmem:[%s1249_s1 + $0xc0] sm:$0xff] }
   0xb   :  { %750 = vmatpush3.bf16.msra.mxu1 %v749_v25  ;;  %v98_v42 = vld [vmem:[%s1249_s1 + $0x1b8] sm:$0xff]  ;;  %v81_v44 = vld [vmem:[%s1249_s1 + $0x130] sm:$0xff]  ;;  %v68_v47 = vld [vmem:[%s1249_s1 + $0xc8] sm:$0xff]  ;;  %v725_v48 = vpack.c.bf16 %v50_v40, %v49_v37 }
   0xc   :  { %752 = vmatprep.subr.bf16.mxu1 %v751_v34  ;;  %v755_v43 = vpack.c.bf16 %v98_v42, %v97_v41  ;;  %v82_v45 = vld [vmem:[%s1249_s1 + $0x138] sm:$0xff]  ;;  %v99_v49 = vld [vmem:[%s1249_s1 + $0x1c0] sm:$0xff]  ;;  %v100_v50 = vld [vmem:[%s1249_s1 + $0x1c8] sm:$0xff]  ;;  %v727_v52 = vpack.c.bf16 %v68_v47, %v67_v46 }
   0xd   :  { %722 = vmatpush3.bf16.msra.mxu0 %v721_v33  ;;  %v757_v51 = vpack.c.bf16 %v82_v45, %v81_v44  ;;  %v51_v53 = vld [vmem:[%s1249_s1 + $0x40] sm:$0xff]  ;;  %v52_v54 = vld [vmem:[%s1249_s1 + $0x48] sm:$0xff]  ;;  %v759_v56 = vpack.c.bf16 %v100_v50, %v99_v49  ;;  %v69_v58 = vld [vmem:[%s1249_s1 + $0xd0] sm:$0xff] }
   0xe   :  { %724 = vmatprep.subr.bf16.mxu0 %v723_v39  ;;  %v83_v55 = vld [vmem:[%s1249_s1 + $0x140] sm:$0xff]  ;;  %v84_v57 = vld [vmem:[%s1249_s1 + $0x148] sm:$0xff]  ;;  %v70_v59 = vld [vmem:[%s1249_s1 + $0xd8] sm:$0xff]  ;;  %v729_v62 = vpack.c.bf16 %v52_v54, %v51_v53 }
   0xf   :  { %754 = vmatpush3.bf16.msra.mxu1 %v753_v38  ;;  %v101_v60 = vld [vmem:[%s1249_s1 + $0x1d0] sm:$0xff]  ;;  %v102_v61 = vld [vmem:[%s1249_s1 + $0x1d8] sm:$0xff]  ;;  %v761_v63 = vpack.c.bf16 %v84_v57, %v83_v55  ;;  %v731_v0 = vpack.c.bf16 %v70_v59, %v69_v58  ;;  %v71_v6 = vld [vmem:[%s1249_s1 + $0xe0] sm:$0xff] }
  0x10   :  { %756 = vmatprep.subr.bf16.mxu1 %v755_v43  ;;  %v53_v1 = vld [vmem:[%s1249_s1 + $0x50] sm:$0xff]  ;;  %v54_v2 = vld [vmem:[%s1249_s1 + $0x58] sm:$0xff]  ;;  %v763_v4 = vpack.c.bf16 %v102_v61, %v101_v60  ;;  %v72_v7 = vld [vmem:[%s1249_s1 + $0xe8] sm:$0xff] }
  0x11   :  { %726 = vmatpush3.bf16.msra.mxu0 %v725_v48  ;;  %v85_v3 = vld [vmem:[%s1249_s1 + $0x150] sm:$0xff]  ;;  %v86_v5 = vld [vmem:[%s1249_s1 + $0x158] sm:$0xff]  ;;  %v103_v8 = vld [vmem:[%s1249_s1 + $0x1e0] sm:$0xff]  ;;  %v733_v10 = vpack.c.bf16 %v54_v2, %v53_v1  ;;  %v735_v14 = vpack.c.bf16 %v72_v7, %v71_v6 }
  0x12   :  { %728 = vmatprep.subr.bf16.mxu0 %v727_v52  ;;  %v104_v9 = vld [vmem:[%s1249_s1 + $0x1e8] sm:$0xff]  ;;  %v55_v11 = vld [vmem:[%s1249_s1 + $0x60] sm:$0xff]  ;;  %v765_v13 = vpack.c.bf16 %v86_v5, %v85_v3  ;;  %v73_v19 = vld [vmem:[%s1249_s1 + $0xf0] sm:$0xff] }
  0x13   :  { %758 = vmatpush3.bf16.msra.mxu1 %v757_v51  ;;  %v24_v12 = vld [vmem:[%s1250_s0 + $0x8] sm:$0xff]  ;;  %v87_v16 = vld [vmem:[%s1249_s1 + $0x160] sm:$0xff]  ;;  %v767_v18 = vpack.c.bf16 %v104_v9, %v103_v8  ;;  %v74_v20 = vld [vmem:[%s1249_s1 + $0xf8] sm:$0xff] }
  0x14   :  { %760 = vmatprep.subr.bf16.mxu1 %v759_v56  ;;  %v56_v15 = vld [vmem:[%s1249_s1 + $0x68] sm:$0xff]  ;;  %194 = vmatprep.mubr.f32.mxu0 %v24_v12  ;;  %v26_v21 = vld [vmem:[%s1250_s0 + $0x18] sm:$0xff]  ;;  %v105_v22 = vld [vmem:[%s1249_s1 + $0x1f0] sm:$0xff]  ;;  %v739_v26 = vpack.c.bf16 %v74_v20, %v73_v19 }
  0x15   :  { %730 = vmatpush3.bf16.msra.mxu0 %v729_v62  ;;  %v88_v17 = vld [vmem:[%s1249_s1 + $0x168] sm:$0xff]  ;;  %v106_v23 = vld [vmem:[%s1249_s1 + $0x1f8] sm:$0xff]  ;;  %279 = vmatprep.mubr.f32.mxu1 %v26_v21  ;;  %v737_v24 = vpack.c.bf16 %v56_v15, %v55_v11  ;;  %v57_v27 = vld [vmem:[%s1249_s1 + $0x70] sm:$0xff]  ;;  %v842_v15 = vmov 0.0|0.0  }
  0x16   :  { %732 = vmatprep.subr.bf16.mxu0 %v731_v0  ;;  %v769_v25 = vpack.c.bf16 %v88_v17, %v87_v16  ;;  %v58_v28 = vld [vmem:[%s1249_s1 + $0x78] sm:$0xff]  ;;  %v89_v29 = vld [vmem:[%s1249_s1 + $0x170] sm:$0xff]  ;;  %v771_v30 = vpack.c.bf16 %v106_v23, %v105_v22  ;;  %v107_v32 = vld [vmem:[%s1249_s1 + $0x200] sm:$0xff] }
  0x17   :  { %762 = vmatpush3.bf16.msra.mxu1 %v761_v63  ;;  %v90_v31 = vld [vmem:[%s1249_s1 + $0x178] sm:$0xff]  ;;  %v108_v33 = vld [vmem:[%s1249_s1 + $0x208] sm:$0xff]  ;;  %v741_v34 = vpack.c.bf16 %v58_v28, %v57_v27  ;;  %v109_v37 = vld [vmem:[%s1249_s1 + $0x210] sm:$0xff] }
  0x18   :  { %764 = vmatprep.subr.bf16.mxu1 %v763_v4  ;;  %v773_v35 = vpack.c.bf16 %v90_v31, %v89_v29  ;;  %v775_v36 = vpack.c.bf16 %v108_v33, %v107_v32  ;;  %v110_v38 = vld [vmem:[%s1249_s1 + $0x218] sm:$0xff]  ;;  %v23_v39 = vld [vmem:[%s1250_s0] sm:$0xff]  ;;  %v25_v40 = vld [vmem:[%s1250_s0 + $0x10] sm:$0xff]  ;;  %v844_v33 = vmov 0.0  }
  0x19   :  { %734 = vmatpush3.bf16.msra.mxu0 %v733_v10  ;;  %v779_v41 = vpack.c.bf16 %v110_v38, %v109_v37  ;;  %v111_v42 = vld [vmem:[%s1249_s1 + $0x220] sm:$0xff]  ;;  %v112_v43 = vld [vmem:[%s1249_s1 + $0x228] sm:$0xff]  ;;  %v29_v44 = vld [vmem:[%s1250_s0 + $0x30] sm:$0xff] }
  0x1a   :  { %736 = vmatprep.subr.bf16.mxu0 %v735_v14  ;;  %v31_v45 = vld [vmem:[%s1250_s0 + $0x40] sm:$0xff]  ;;  %v28_v46 = vld [vmem:[%s1250_s0 + $0x28] sm:$0xff]  ;;  %v783_v47 = vpack.c.bf16 %v112_v43, %v111_v42  ;;  %v30_v48 = vld [vmem:[%s1250_s0 + $0x38] sm:$0xff] }
  0x1b   :  { %766 = vmatpush3.bf16.msra.mxu1 %v765_v13  ;;  %v113_v49 = vld [vmem:[%s1249_s1 + $0x230] sm:$0xff]  ;;  %v114_v50 = vld [vmem:[%s1249_s1 + $0x238] sm:$0xff]  ;;  %v36_v52 = vld [vmem:[%s1250_s0 + $0x68] sm:$0xff] }
  0x1c   :  { %768 = vmatprep.subr.bf16.mxu1 %v767_v18  ;;  %v34_v51 = vld [vmem:[%s1250_s0 + $0x58] sm:$0xff]  ;;  %v33_v53 = vld [vmem:[%s1250_s0 + $0x50] sm:$0xff]  ;;  %v787_v54 = vpack.c.bf16 %v114_v50, %v113_v49  ;;  %v35_v55 = vld [vmem:[%s1250_s0 + $0x60] sm:$0xff] }
  0x1d   :  { %738 = vmatpush3.bf16.msra.mxu0 %v737_v24  ;;  %v115_v56 = vld [vmem:[%s1249_s1 + $0x240] sm:$0xff]  ;;  %v116_v57 = vld [vmem:[%s1249_s1 + $0x248] sm:$0xff]  ;;  %v41_v59 = vld [vmem:[%s1250_s0 + $0x90] sm:$0xff] }
  0x1e   :  { %740 = vmatprep.subr.bf16.mxu0 %v739_v26  ;;  %v39_v58 = vld [vmem:[%s1250_s0 + $0x80] sm:$0xff]  ;;  %v38_v60 = vld [vmem:[%s1250_s0 + $0x78] sm:$0xff]  ;;  %v791_v61 = vpack.c.bf16 %v116_v57, %v115_v56  ;;  %v40_v62 = vld [vmem:[%s1250_s0 + $0x88] sm:$0xff] }
  0x1f   :  { %770 = vmatpush3.bf16.msra.mxu1 %v769_v25  ;;  %v117_v63 = vld [vmem:[%s1249_s1 + $0x250] sm:$0xff]  ;;  %v118_v0 = vld [vmem:[%s1249_s1 + $0x258] sm:$0xff]  ;;  %v27_v1 = vld [vmem:[%s1250_s0 + $0x20] sm:$0xff] }
  0x20   :  { %772 = vmatprep.subr.bf16.mxu1 %v771_v30  ;;  %v795_v2 = vpack.c.bf16 %v118_v0, %v117_v63  ;;  %v119_v3 = vld [vmem:[%s1249_s1 + $0x260] sm:$0xff]  ;;  %v120_v4 = vld [vmem:[%s1249_s1 + $0x268] sm:$0xff]  ;;  %v121_v6 = vld [vmem:[%s1249_s1 + $0x270] sm:$0xff] }
  0x21   :  { %742 = vmatpush3.bf16.msra.mxu0 %v741_v34  ;;  %v799_v5 = vpack.c.bf16 %v120_v4, %v119_v3  ;;  %v122_v7 = vld [vmem:[%s1249_s1 + $0x278] sm:$0xff]  ;;  %v32_v9 = vld [vmem:[%s1250_s0 + $0x48] sm:$0xff]  ;;  %v37_v10 = vld [vmem:[%s1250_s0 + $0x70] sm:$0xff] }
  0x22   :  { %776 = vmatprep.subr.bf16.mxu0 %v775_v36  ;;  %v803_v8 = vpack.c.bf16 %v122_v7, %v121_v6  ;;  %v42_v11 = vld [vmem:[%s1250_s0 + $0x98] sm:$0xff]  ;;  %v413_v12 = vld [vmem:[%s1251_s4] sm:$0xff]  ;;  %v414_v13 = vld [vmem:[%s1251_s4 + $0x8] sm:$0xff] }
  0x23   :  { %774 = vmatpush3.bf16.msra.mxu1 %v773_v35  ;;  %v808_v14 = vpack.c.bf16 %v414_v13, %v413_v12  ;;  %v415_v16 = vld [vmem:[%s1251_s4 + $0x10] sm:$0xff]  ;;  %v416_v17 = vld [vmem:[%s1251_s4 + $0x18] sm:$0xff]  ;;  %v417_v19 = vld [vmem:[%s1251_s4 + $0x20] sm:$0xff] }
  0x24   :  { %195 = vmatmul.mubr.f32.vlgmr.msra.gmra.mrb[0].mxu0 %v23_v39  ;;  %807 = vmatprep.subr.bf16.mxu1 %v842_v15  ;;  %v811_v18 = vpack.c.bf16 %v416_v17, %v415_v16  ;;  %v418_v20 = vld [vmem:[%s1251_s4 + $0x28] sm:$0xff]  ;;  %v419_v22 = vld [vmem:[%s1251_s4 + $0x30] sm:$0xff]  ;;  %v420_v23 = vld [vmem:[%s1251_s4 + $0x38] sm:$0xff] }
  0x25   :  { %778 = vmatpush3.bf16.msra.mxu0 %v775_v36  ;;  %199 = vmatprep.mubr.f32.mxu0 %v29_v44  ;;  %v814_v21 = vpack.c.bf16 %v418_v20, %v417_v19  ;;  %v817_v24 = vpack.c.bf16 %v420_v23, %v419_v22  ;;  %v421_v25 = vld [vmem:[%s1251_s4 + $0x40] sm:$0xff]  ;;  %v422_v26 = vld [vmem:[%s1251_s4 + $0x48] sm:$0xff]  ;;  %v423_v28 = vld [vmem:[%s1251_s4 + $0x50] sm:$0xff] }
  0x26   :  { %280 = vmatmul.mubr.f32.vlgmr.msra.gmra.mrb[0].mxu1 %v25_v40  ;;  %780 = vmatprep.subr.bf16.mxu0 %v779_v41  ;;  %v820_v27 = vpack.c.bf16 %v422_v26, %v421_v25  ;;  %v424_v29 = vld [vmem:[%s1251_s4 + $0x58] sm:$0xff]  ;;  %v425_v31 = vld [vmem:[%s1251_s4 + $0x60] sm:$0xff]  ;;  %v426_v32 = vld [vmem:[%s1251_s4 + $0x68] sm:$0xff] }
  0x27   :  { %284 = vmatprep.mubr.f32.mxu1 %v31_v45  ;;  %809 = vmatpush3.bf16.msra.mxu1 %v808_v14  ;;  %v823_v30 = vpack.c.bf16 %v424_v29, %v423_v28  ;;  %v826_v34 = vpack.c.bf16 %v426_v32, %v425_v31  ;;  %v427_v35 = vld [vmem:[%s1251_s4 + $0x70] sm:$0xff]  ;;  %v428_v36 = vld [vmem:[%s1251_s4 + $0x78] sm:$0xff]  ;;  %v511_v39 = vld [vmem:[%s1252_s2] ss:$0 sm:$0xff] }
  0x28   :  { %200 = vmatmul.mubr.f32.gmra.mrb[2].mxu0 %v28_v46  ;;  %810 = vmatprep.subr.bf16.mxu1 %v842_v15  ;;  %v829_v37 = vpack.c.bf16 %v428_v36, %v427_v35  ;;  %v389_v16 = vld [vmem:[%s1253_s3] sm:$0xff]  ;;  %v391_v22 = vld [vmem:[%s1253_s3 + $0x10] sm:$0xff] }
  0x29   :  { %782 = vmatpush3.bf16.msra.mxu0 %v779_v41  ;;  %204 = vmatprep.mubr.f32.mxu0 %v34_v51 }
  0x2a   :  { %285 = vmatmul.mubr.f32.gmra.mrb[2].mxu1 %v30_v48  ;;  %784 = vmatprep.subr.bf16.mxu0 %v783_v47 }
  0x2b   :  { %289 = vmatprep.mubr.f32.mxu1 %v36_v52  ;;  %812 = vmatpush3.bf16.msra.mxu1 %v811_v18 }
  0x2c   :  { %205 = vmatmul.mubr.f32.gmra.mrb[4].mxu0 %v33_v53  ;;  %813 = vmatprep.subr.bf16.mxu1 %v842_v15 }
  0x2d   :  { %786 = vmatpush3.bf16.msra.mxu0 %v783_v47  ;;  %209 = vmatprep.mubr.f32.mxu0 %v39_v58 }
  0x2e   :  { %290 = vmatmul.mubr.f32.gmra.mrb[4].mxu1 %v35_v55  ;;  %788 = vmatprep.subr.bf16.mxu0 %v787_v54 }
  0x2f   :  { %294 = vmatprep.mubr.f32.mxu1 %v41_v59  ;;  %815 = vmatpush3.bf16.msra.mxu1 %v814_v21  ;;  %v392_v21 = vld [vmem:[%s1253_s3 + $0x18] sm:$0xff] }
  0x30   :  { %210 = vmatmul.mubr.f32.gmra.mrb[6].mxu0 %v38_v60  ;;  %816 = vmatprep.subr.bf16.mxu1 %v842_v15 }
  0x31   :  { %790 = vmatpush3.bf16.msra.mxu0 %v787_v54  ;;  %670 = vmatprep.mubr.f32.mxu0 %v27_v1 }
  0x32   :  { %295 = vmatmul.mubr.f32.gmra.mrb[6].mxu1 %v40_v62  ;;  %792 = vmatprep.subr.bf16.mxu0 %v791_v61 }
  0x33   :  { %818 = vmatpush3.bf16.msra.mxu1 %v817_v24  ;;  %708 = vmatprep.mubr.msk.f32.mxu1 %vm843_vm0, %v844_v33 }
  0x34   :  { %819 = vmatprep.subr.bf16.mxu1 %v842_v15 }
  0x35   :  { %794 = vmatpush3.bf16.msra.mxu0 %v791_v61 }
  0x36   :  { %796 = vmatprep.subr.bf16.mxu0 %v795_v2 }
  0x37   :  { %821 = vmatpush3.bf16.msra.mxu1 %v820_v27 }
  0x38   :  { %822 = vmatprep.subr.bf16.mxu1 %v842_v15 }
  0x39   :  { %798 = vmatpush3.bf16.msra.mxu0 %v795_v2 }
  0x3a   :  { %800 = vmatprep.subr.bf16.mxu0 %v799_v5 }
  0x3b   :  { %824 = vmatpush3.bf16.msra.mxu1 %v823_v30 }
  0x3c   :  { %825 = vmatprep.subr.bf16.mxu1 %v842_v15 }
  0x3d   :  { %802 = vmatpush3.bf16.msra.mxu0 %v799_v5 }
  0x3e   :  { %804 = vmatprep.subr.bf16.mxu0 %v803_v8 }
  0x3f   :  { %827 = vmatpush3.bf16.msra.mxu1 %v826_v34 }
  0x40   :  { %828 = vmatprep.subr.bf16.mxu1 %v842_v15  ;;  %v390_v15 = vld [vmem:[%s1253_s3 + $0x8] sm:$0xff] }
  0x41   :  { %806 = vmatpush3.bf16.msra.mxu0 %v803_v8 }
  0x43   :  { %830 = vmatpush3.bf16.msra.mxu1 %v829_v37 }
  0x44   :  { %671 = vmatmul.mubr.f32.vlgmr.msra.gmra.mrb[8].mxu0 %v32_v9 }
  0x45   :  { %673 = vmatprep.mubr.f32.mxu0 %v37_v10 }
  0x48   :  { %674 = vmatmul.mubr.f32.gmra.mrb[10].mxu0 %v42_v11 }
  0xf7   :  { %v545_v38 = vpop.f32.mrb[0].mxu0 }
  0xf8   :  { %v546_v40 = vpop.f32.mrb[1].mxu0 }
  0xf9   :  { %v589_v41 = vpop.f32.mrb[0].mxu1  ;;  %v547_v42 = vadd.f32 %v546_v40, %v545_v38 }
  0xfa   :  { %v590_v43 = vpop.f32.mrb[1].mxu1 }
  0xfb   :  { %v591_v44 = vadd.f32 %v590_v43, %v589_v41  ;;  %v197_v45 = vadd.f32 %v547_v42, %v511_v39  ;;  %v548_v46 = vpop.f32.mrb[2].mxu0  ;;  %v512_v42 = vld [vmem:[%s1254_s5] ss:$0 sm:$0xff] }
  0xfc   :  { %v549_v47 = vpop.f32.mrb[3].mxu0 }
  0xfd   :  { %v592_v48 = vpop.f32.mrb[2].mxu1  ;;  %v550_v49 = vadd.f32 %v549_v47, %v548_v46  ;;  %v282_v51 = vadd.f32 %v591_v44, %v197_v45 }
  0xfe   :  { %v593_v50 = vpop.f32.mrb[3].mxu1 }
  0xff   :  { %v594_v52 = vadd.f32 %v593_v50, %v592_v48  ;;  %v202_v53 = vadd.f32 %v550_v49, %v511_v39  ;;  %v551_v54 = vpop.f32.mrb[4].mxu0 }
 0x100   :  { %v552_v55 = vpop.f32.mrb[5].mxu0 }
 0x101   :  { %v595_v56 = vpop.f32.mrb[4].mxu1  ;;  %v553_v57 = vadd.f32 %v552_v55, %v551_v54  ;;  %v287_v59 = vadd.f32 %v594_v52, %v202_v53 }
 0x102   :  { %v596_v58 = vpop.f32.mrb[5].mxu1 }
 0x103   :  { %v597_v60 = vadd.f32 %v596_v58, %v595_v56  ;;  %v207_v61 = vadd.f32 %v553_v57, %v511_v39  ;;  %v554_v62 = vpop.f32.mrb[6].mxu0 }
 0x104   :  { %v555_v63 = vpop.f32.mrb[7].mxu0 }
 0x105   :  { %v598_v0 = vpop.f32.mrb[6].mxu1  ;;  %v556_v1 = vadd.f32 %v555_v63, %v554_v62  ;;  %v292_v3 = vadd.f32 %v597_v60, %v207_v61 }
 0x106   :  { %v599_v2 = vpop.f32.mrb[7].mxu1 }
 0x107   :  { %v600_v4 = vadd.f32 %v599_v2, %v598_v0  ;;  %v212_v5 = vadd.f32 %v556_v1, %v511_v39 }
 0x109   :  { %v297_v6 = vadd.f32 %v600_v4, %v212_v5 }
 0x117   :  { %v672_v7 = vpop.f32.mrb[8].mxu0 }
 0x118   :  { %v372_v8 = vadd.f32 %v672_v7, %v287_v59  ;;  %v366_v9 = vpop.f32.mrb[9].mxu0 }
 0x119   :  { %v367_v10 = vadd.f32 %v366_v9, %v282_v51 }
 0x11a   :  { %834 = vtanh.f32 %v372_v8 }
 0x11b   :  { %836 = vtanh.f32 %v367_v10  ;;  %v675_v11 = vpop.f32.mrb[10].mxu0 }
 0x11c   :  { %v382_v12 = vadd.f32 %v675_v11, %v297_v6  ;;  %v376_v13 = vpop.f32.mrb[11].mxu0 }
 0x11d   :  { %v377_v14 = vadd.f32 %v376_v13, %v292_v3 }
 0x11e   :  { %838 = vtanh.f32 %v382_v12 }
 0x11f   :  { %840 = vtanh.f32 %v377_v14 }
 0x124   :  { %v835_v17 = vpop.eup %834 }
 0x125   :  { %v837_v18 = vpop.eup %836  ;;  %v394_v19 = vadd.f32 %v835_v17, %v390_v15 }
 0x126   :  { %v393_v20 = vadd.f32 %v837_v18, %v389_v16 }
 0x128   :  { %v839_v23 = vpop.eup %838  ;;  %v397_v24 = vmax.f32 %v393_v20, %v394_v19 }
 0x129   :  { %v841_v25 = vpop.eup %840  ;;  %v396_v26 = vadd.f32 %v839_v23, %v392_v21 }
 0x12a   :  { %v398_v27 = vrot.slane %v397_v24, 4  ;;  %v395_v28 = vadd.f32 %v841_v25, %v391_v22 }
 0x12c   :  { %v404_v29 = vmax.f32 %v395_v28, %v396_v26  ;;  %v399_v30 = vmax.f32 %v397_v24, %v398_v27 }
 0x12e   :  { %v405_v31 = vrot.slane %v404_v29, 4  ;;  %v400_v32 = vrot.slane %v399_v30, 2 }
 0x130   :  { %v401_v33 = vmax.f32 %v399_v30, %v400_v32  ;;  %v406_v34 = vmax.f32 %v404_v29, %v405_v31 }
 0x132   :  { %v407_v35 = vrot.slane %v406_v34, 2  ;;  %v402_v36 = vrot.slane %v401_v33, 1 }
 0x134   :  { %v408_v37 = vmax.f32 %v406_v34, %v407_v35  ;;  %v403_v39 = vmax.f32 %v401_v33, %v402_v36 }
 0x136   :  { %v409_v38 = vrot.slane %v408_v37, 1 }
 0x138   :  { %v410_v40 = vmax.f32 %v408_v37, %v409_v38 }
 0x13a   :  { %v412_v41 = vsel %vm411_vm1, %v403_v39, %v410_v40 }
 0x13b   :  { %709 = vmatmul.mubr.f32.vlgmr.msra.gmra.mrb[8].mxu1 %v412_v41 }
 0x20e   :  { %v502_v43 = vpop.f32.mrb[8].mxu1 }
 0x20f   :  { %v503_v44 = vadd.f32 %v512_v42, %v502_v43  ;;  %v710_v45 = vpop.f32.mrb[9].mxu1 }
 0x211   :  { %506 = vst [vmem:[%s1255_s6] sm:$0x3] %v503_v44 }

</bundles_post_ra>
